<compile_context>
chip_gen: v7x
topology: tpu7x:2x2x1
jax: 0.10.0
libtpu: 0.0.40
codegen_flags: <defaults>
</compile_context>

<pallas_src>
import functools
import math

import jax
import jax.numpy as jnp
from jax.experimental import pallas as pl
from jax.experimental.pallas import tpu as pltpu


def _layernorm_kernel(x_ref, a_ref, b_ref, o_ref, *, eps, feat):
    # x_ref: (RB, D) block of rows; a_ref/b_ref: (1, D) scale/bias; o_ref: (RB, D)
    x = x_ref[...].astype(jnp.float32)
    mean = jnp.mean(x, axis=-1, keepdims=True)                      # (RB, 1)
    xc = x - mean
    # torch.std default is unbiased (ddof=1); eps is added to std (not var),
    # exactly matching the PyTorch LayerNorm in the spec.
    var = jnp.sum(xc * xc, axis=-1, keepdims=True) / (feat - 1.0)
    std = jnp.sqrt(var)
    y = a_ref[...] * (xc / (std + eps)) + b_ref[...]
    o_ref[...] = y.astype(o_ref.dtype)


def layernorm_forward(x, a_2, b_2, *, eps=1e-6, row_block=256):
    """x: [..., d_model]; a_2, b_2: [d_model] -> same shape as x."""
    *lead, d = x.shape
    n = 1
    for s in lead:
        n *= s
    x2 = x.reshape(n, d)

    # Large, 8-aligned row blocks that evenly divide n (fall back to a single
    # full block when n is small / oddly shaped).
    rb = math.gcd(n, row_block)
    if rb != n and rb % 8 != 0:
        rb = n

    a2 = a_2.reshape(1, d).astype(jnp.float32)
    b2 = b_2.reshape(1, d).astype(jnp.float32)

    out = pl.pallas_call(
        functools.partial(_layernorm_kernel, eps=float(eps), feat=float(d)),
        out_shape=jax.ShapeDtypeStruct((n, d), x.dtype),
        grid_spec=pltpu.PrefetchScalarGridSpec(
            num_scalar_prefetch=0,
            grid=(n // rb,),
            in_specs=[
                pl.BlockSpec((rb, d), lambda i: (i, 0)),   # row block
                pl.BlockSpec((1, d), lambda i: (0, 0)),    # a_2 (block-invariant)
                pl.BlockSpec((1, d), lambda i: (0, 0)),    # b_2 (block-invariant)
            ],
            out_specs=pl.BlockSpec((rb, d), lambda i: (i, 0)),
        ),
        compiler_params=pltpu.CompilerParams(
            dimension_semantics=("parallel",)),
    )(x2, a2, b2)

    return out.reshape(*lead, d)


def decoder_forward(x, memory, src_mask, tgt_mask, a_2, b_2, *,
                    num_layers=2, eps=1e-6):
    """Generic N-layer decoder forward followed by the custom LayerNorm."""
    # TODO(synk): DecoderLayer (self-attn / src-attn / FFN sublayers) is not
    # defined in the provided spec, so the N stacked layers are identity here;
    # only the Decoder's trailing LayerNorm runs as a Pallas kernel.
    for _ in range(num_layers):
        x = x
    return layernorm_forward(x, a_2, b_2, eps=eps)


if __name__ == "__main__":
    # Small shapes consistent with the module (spec uses d_model=512).
    batch, seq, d_model = 2, 8, 512
    num_layers = 2
    eps = 1e-6

    key = jax.random.PRNGKey(0)
    kx, km, ka, kb = jax.random.split(key, 4)

    x = jax.random.normal(kx, (batch, seq, d_model), dtype=jnp.float32)
    memory = jax.random.normal(km, (batch, seq, d_model), dtype=jnp.float32)
    src_mask = jnp.ones((batch, 1, seq), dtype=jnp.float32)
    tgt_mask = jnp.tril(jnp.ones((seq, seq), dtype=jnp.float32))[None]

    # LayerNorm parameters (trainable in PyTorch; random here to exercise them).
    a_2 = 1.0 + 0.1 * jax.random.normal(ka, (d_model,), dtype=jnp.float32)
    b_2 = 0.1 * jax.random.normal(kb, (d_model,), dtype=jnp.float32)

    out = decoder_forward(x, memory, src_mask, tgt_mask, a_2, b_2,
                          num_layers=num_layers, eps=eps)
    out = jax.block_until_ready(out)

    # Reference: plain JAX, same math as the PyTorch LayerNorm (unbiased std,
    # eps added to std) applied after identity layers.
    mean = x.mean(-1, keepdims=True)
    xc = x - mean
    std = jnp.sqrt((xc * xc).sum(-1, keepdims=True) / (d_model - 1))
    ref = a_2 * xc / (std + eps) + b_2

    assert out.shape == (batch, seq, d_model)
    assert jnp.allclose(out, ref, atol=1e-5, rtol=1e-5)

    print("KERNEL_OK")
</pallas_src>

<mosaic_0001>
module attributes {stable_mosaic.version = 11 : i64} {
  func.func @_layernorm_kernel(%arg0: i32, %arg1: memref<16x512xf32, #tpu.memory_space<vmem>>, %arg2: memref<1x512xf32, #tpu.memory_space<vmem>>, %arg3: memref<1x512xf32, #tpu.memory_space<vmem>>, %arg4: memref<16x512xf32, #tpu.memory_space<vmem>>) attributes {dimension_semantics = [#tpu.dimension_semantics<parallel>], iteration_bounds = array<i64: 1>, scalar_prefetch = 0 : i64, scratch_operands = 0 : i64, tpu.core_type = #tpu.core_type<tc>, window_params = [{transform_indices = @transform_0, window_bounds = array<i64: 16, 512>}, {pipeline_mode = #tpu.pipeline_mode<synchronous>, transform_indices = @transform_1, window_bounds = array<i64: 1, 512>}, {pipeline_mode = #tpu.pipeline_mode<synchronous>, transform_indices = @transform_2, window_bounds = array<i64: 1, 512>}, {transform_indices = @transform_3, window_bounds = array<i64: 16, 512>}]} {
    %c0 = arith.constant 0 : index
    %c0_0 = arith.constant 0 : index
    %0 = vector.load %arg1[%c0, %c0_0] : memref<16x512xf32, #tpu.memory_space<vmem>>, vector<16x512xf32>
    %cst = arith.constant dense<0.000000e+00> : vector<16xf32>
    %1 = vector.multi_reduction <add>, %0, %cst [1] : vector<16x512xf32> to vector<16xf32>
    %2 = vector.shape_cast %1 : vector<16xf32> to vector<16x1xf32>
    %cst_1 = arith.constant 5.120000e+02 : f32
    %3 = vector.broadcast %cst_1 : f32 to vector<16x1xf32>
    %4 = arith.divf %2, %3 : vector<16x1xf32>
    %5 = vector.broadcast %4 : vector<16x1xf32> to vector<16x512xf32>
    %6 = arith.subf %0, %5 : vector<16x512xf32>
    %7 = arith.mulf %6, %6 : vector<16x512xf32>
    %cst_2 = arith.constant dense<0.000000e+00> : vector<16xf32>
    %8 = vector.multi_reduction <add>, %7, %cst_2 [1] : vector<16x512xf32> to vector<16xf32>
    %9 = vector.shape_cast %8 : vector<16xf32> to vector<16x1xf32>
    %cst_3 = arith.constant 5.110000e+02 : f32
    %10 = vector.broadcast %cst_3 : f32 to vector<16x1xf32>
    %11 = arith.divf %9, %10 : vector<16x1xf32>
    %12 = math.sqrt %11 : vector<16x1xf32>
    %c0_4 = arith.constant 0 : index
    %c0_5 = arith.constant 0 : index
    %13 = vector.load %arg2[%c0_4, %c0_5] : memref<1x512xf32, #tpu.memory_space<vmem>>, vector<1x512xf32>
    %cst_6 = arith.constant 9.99999997E-7 : f32
    %14 = vector.broadcast %cst_6 : f32 to vector<16x1xf32>
    %15 = arith.addf %12, %14 : vector<16x1xf32>
    %16 = vector.broadcast %15 : vector<16x1xf32> to vector<16x512xf32>
    %17 = arith.divf %6, %16 : vector<16x512xf32>
    %18 = vector.broadcast %13 : vector<1x512xf32> to vector<16x512xf32>
    %19 = arith.mulf %18, %17 : vector<16x512xf32>
    %c0_7 = arith.constant 0 : index
    %c0_8 = arith.constant 0 : index
    %20 = vector.load %arg3[%c0_7, %c0_8] : memref<1x512xf32, #tpu.memory_space<vmem>>, vector<1x512xf32>
    %21 = vector.broadcast %20 : vector<1x512xf32> to vector<16x512xf32>
    %22 = arith.addf %19, %21 : vector<16x512xf32>
    %c0_9 = arith.constant 0 : index
    %c0_10 = arith.constant 0 : index
    %23 = vector.load %arg4[%c0_9, %c0_10] : memref<16x512xf32, #tpu.memory_space<vmem>>, vector<16x512xf32>
    tpu.vector_store %arg4[%c0_9, %c0_10], %22 {strides = array<i32>} : memref<16x512xf32, #tpu.memory_space<vmem>>, vector<16x512xf32>,
    return
  }
  func.func @transform_0(%arg0: i32) -> (i32, i32) {
    %c0_i32 = arith.constant 0 : i32
    %c0_i32_0 = arith.constant 0 : i32
    return %arg0, %c0_i32 : i32, i32
  }
  func.func @transform_1(%arg0: i32) -> (i32, i32) {
    %c0_i32 = arith.constant 0 : i32
    %c0_i32_0 = arith.constant 0 : i32
    %c0_i32_1 = arith.constant 0 : i32
    return %c0_i32, %c0_i32_0 : i32, i32
  }
  func.func @transform_2(%arg0: i32) -> (i32, i32) {
    %c0_i32 = arith.constant 0 : i32
    %c0_i32_0 = arith.constant 0 : i32
    %c0_i32_1 = arith.constant 0 : i32
    return %c0_i32, %c0_i32_0 : i32, i32
  }
  func.func @transform_3(%arg0: i32) -> (i32, i32) {
    %c0_i32 = arith.constant 0 : i32
    %c0_i32_0 = arith.constant 0 : i32
    return %arg0, %c0_i32 : i32, i32
  }
}

</mosaic_0001>

<bundles_post_ra>
// kernel: tpu_custom_call.1
= control target key start
LH: loop header
LB: loop body
LE: loop exit
PB: predicated region body
PF: predicated region fallthrough
CT: control target
= control target key end

     0   :  { %8 = vsyncpa [#allocation3], 0  ;;  %s393_s0 = inlined_call_operand.hbm [shape: f32[16,512], index: 0, kind: input, shape index: {}]   ;;  %s394_s1 = inlined_call_operand.hbm [shape: f32[1,512], index: 1, kind: input, shape index: {}]   ;;  %s395_s2 = inlined_call_operand.vmem [shape: f32[1,512], index: 2, kind: input, shape index: {}]   ;;  %s396_s3 = inlined_call_operand.hbm [shape: f32[16,512], index: 3, kind: output, shape index: {}]  }
   0x1   :  { %9 = vsyncpa [#allocation6], 0 }
   0x2   :  { %10 = vsyncpa [#allocation4], 0  ;;  %s288_s12 = smov [#allocation2]   ;;  %s216_s16 = scalar_lea.hbm %s393_s0, 1024 }
   0x3   :  { %s16_s13 = sshll.u32 %s288_s12, 4  ;;  %p217_p0 = scmp.ne.s32.totalorder %s393_s0, %s216_s16  ;;  %s17_s13 = int_to_ptr.vmem [resolvable:$true] %s16_s13 }
   0x4   :  { %p220_p1 = scmp.lt.u32.totalorder %s216_s16, %s393_s0 }
   0x6   :  { %p222_p2 = pnand %p220_p1, %p217_p0 }
   0x8   :  { %225 = shalt.err (!%p222_p2)
}
   0x9   :  { %s226_s21 = scalar_lea.vmem %s17_s13, 1024  ;;  %p231_p4 = scmp.lt.s32.totalorder %s17_s13, %s17_s13 }
   0xa   :  { %p227_p3 = scmp.ne.s32.totalorder %s17_s13, %s226_s21  ;;  %p232_p5 = scmp.lt.s32.totalorder %s226_s21, %s226_s21 }
   0xc   :  { %p233_p6 = por %p232_p5, %p231_p4 }
   0xe   :  { %p234_p7 = pnand %p233_p6, %p227_p3 }
  0x10   :  { %237 = shalt.err (!%p234_p7)
}
  0x11   :  { %s289_s22 = smov 512   ;;  %s290_s23 = smov 32  }
  0x12   :  { %22 = dma.hbm_to_vmem [thread:$0]  %s393_s0, 1024, %s17_s13, [#allocation3], %s289_s22, %s289_s22, %s290_s23  }
  0x13   :  { %s291_s26 = smov [#allocation5]   ;;  %s238_s30 = scalar_lea.hbm %s394_s1, 64 }
  0x14   :  { %s29_s27 = sshll.u32 %s291_s26, 4  ;;  %p239_p8 = scmp.ne.s32.totalorder %s394_s1, %s238_s30  ;;  %s30_s27 = int_to_ptr.vmem [resolvable:$true] %s29_s27 }
  0x15   :  { %p242_p9 = scmp.lt.u32.totalorder %s238_s30, %s394_s1 }
  0x17   :  { %p244_p10 = pnand %p242_p9, %p239_p8 }
  0x19   :  { %247 = shalt.err (!%p244_p10)
}
  0x1a   :  { %s248_s8 = scalar_lea.vmem %s30_s27, 64  ;;  %p253_p12 = scmp.lt.s32.totalorder %s30_s27, %s30_s27 }
  0x1b   :  { %p249_p11 = scmp.ne.s32.totalorder %s30_s27, %s248_s8  ;;  %p254_p13 = scmp.lt.s32.totalorder %s248_s8, %s248_s8 }
  0x1d   :  { %p255_p0 = por %p254_p13, %p253_p12 }
  0x1f   :  { %p256_p1 = pnand %p255_p0, %p249_p11 }
  0x21   :  { %259 = shalt.err (!%p256_p1)
}
  0x22   :  { %32 = dma.hbm_to_vmem [thread:$0]  %s394_s1, 64, %s30_s27, [#allocation6]  }
  0x23   :  { %282 = dma.done.wait [#allocation3], 1024  }
  0x24   :  { %283 = vsyncadd [#allocation3], 4294966272 }
  0x25   :  { %284 = dma.done.wait [#allocation6], 64  }
  0x26   :  { %285 = vsyncadd [#allocation6], 4294967232  ;;  %v41_v0 = vld [vmem:[#allocation2] sm:$0xff]  ;;  %v42_v1 = vld [vmem:[#allocation2 + $0x8] sm:$0xff]  ;;  %v119_v50 = vlaneseq }
  0x27   :  { %v43_v2 = vld [vmem:[#allocation2 + $0x10] sm:$0xff]  ;;  %v49_v3 = vadd.f32 %v42_v1, %v41_v0  ;;  %v45_v4 = vld [vmem:[#allocation2 + $0x20] sm:$0xff]  ;;  %v46_v5 = vld [vmem:[#allocation2 + $0x28] sm:$0xff] }
  0x28   :  { %v44_v6 = vld [vmem:[#allocation2 + $0x18] sm:$0xff]  ;;  %v47_v7 = vld [vmem:[#allocation2 + $0x30] sm:$0xff]  ;;  %v54_v8 = vadd.f32 %v46_v5, %v45_v4  ;;  %v120_v56 = vshrl.u32 %v119_v50, 7  ;;  %v105_v62 = vld [vmem:[#allocation5] sm:$0xf] }
  0x29   :  { %v50_v9 = vadd.f32 %v49_v3, %v43_v2  ;;  %v48_v10 = vld [vmem:[#allocation2 + $0x38] sm:$0xff]  ;;  %v147_v3 = vld [vmem:[%s395_s2] sm:$0xf]  ;;  %s292_s2 = smov [#allocation7]  }
  0x2a   :  { %v55_v11 = vadd.f32 %v54_v8, %v47_v7  ;;  %v121_v58 = vsub.s32 0, %v120_v56  ;;  %v125_v59 = vsub.s32 1, %v120_v56  ;;  %v129_v60 = vsub.s32 2, %v120_v56  ;;  %s190_s11 = sshll.u32 %s292_s2, 4  ;;  %s191_s11 = int_to_ptr.vmem [resolvable:$true] %s190_s11 }
  0x2b   :  { %v51_v12 = vadd.f32 %v50_v9, %v44_v6  ;;  %v133_v61 = vsub.s32 3, %v120_v56  ;;  %s260_s12 = scalar_lea.vmem %s191_s11, 1024  ;;  %p265_p3 = scmp.lt.s32.totalorder %s191_s11, %s191_s11 }
  0x2c   :  { %v56_v13 = vadd.f32 %v55_v11, %v48_v10  ;;  %v122_v63 = vrot.slane %v105_v62, %v121_v58  ;;  %v152_v9 = vrot.slane %v147_v3, %v121_v58  ;;  %v160_v11 = vrot.slane %v147_v3, %v129_v60  ;;  %p261_p2 = scmp.ne.s32.totalorder %s191_s11, %s260_s12  ;;  %p266_p4 = scmp.lt.s32.totalorder %s260_s12, %s260_s12 }
  0x2d   :  { %52 = vadd.xlane.f32.xlu0 %v51_v12  ;;  %v164_v12 = vrot.slane %v147_v3, %v133_v61 }
  0x2e   :  { %p267_p5 = por %p266_p4, %p265_p3 }
  0x30   :  { %p268_p6 = pnand %p267_p5, %p261_p2 }
  0x31   :  { %57 = vadd.xlane.f32.xlu0 %v56_v13 }
  0xba   :  { %v53_v14 = vpop.xlane.xlu0 %52 }
  0xbb   :  { %v60_v15 = vmul.f32 0.001953125, %v53_v14 }
  0xbd   :  { %v340_v16 = vsub.f32 %v41_v0, %v60_v15  ;;  %v342_v17 = vsub.f32 %v42_v1, %v60_v15  ;;  %v344_v18 = vsub.f32 %v43_v2, %v60_v15  ;;  %v65_v20 = vsub.f32 %v44_v6, %v60_v15 }
  0xbe   :  { %v58_v19 = vpop.xlane.xlu0 %57  ;;  %v126_v0 = vrot.slane %v105_v62, %v125_v59  ;;  %v130_v1 = vrot.slane %v105_v62, %v129_v60  ;;  %v134_v2 = vrot.slane %v105_v62, %v133_v61 }
  0xbf   :  { %v61_v21 = vmul.f32 0.001953125, %v58_v19  ;;  %v70_v22 = vmul.f32 %v340_v16, %v340_v16  ;;  %v71_v23 = vmul.f32 %v342_v17, %v342_v17  ;;  %v72_v24 = vmul.f32 %v344_v18, %v344_v18 }
  0xc0   :  { %v73_v29 = vmul.f32 %v65_v20, %v65_v20 }
  0xc1   :  { %v352_v25 = vsub.f32 %v45_v4, %v61_v21  ;;  %v354_v26 = vsub.f32 %v46_v5, %v61_v21  ;;  %v78_v27 = vadd.f32 %v71_v23, %v70_v22  ;;  %v356_v28 = vsub.f32 %v47_v7, %v61_v21 }
  0xc2   :  { %v358_v31 = vsub.f32 %v48_v10, %v61_v21  ;;  %v156_v10 = vrot.slane %v147_v3, %v125_v59 }
  0xc3   :  { %v79_v30 = vadd.f32 %v78_v27, %v72_v24  ;;  %v74_v32 = vmul.f32 %v352_v25, %v352_v25  ;;  %v75_v33 = vmul.f32 %v354_v26, %v354_v26  ;;  %v76_v35 = vmul.f32 %v356_v28, %v356_v28 }
  0xc4   :  { %v77_v37 = vmul.f32 %v358_v31, %v358_v31 }
  0xc5   :  { %v80_v34 = vadd.f32 %v79_v30, %v73_v29  ;;  %v83_v36 = vadd.f32 %v75_v33, %v74_v32 }
  0xc7   :  { %81 = vadd.xlane.f32.xlu1 %v80_v34  ;;  %v84_v38 = vadd.f32 %v83_v36, %v76_v35 }
  0xc9   :  { %v85_v39 = vadd.f32 %v84_v38, %v77_v37 }
  0xcb   :  { %86 = vadd.xlane.f32.xlu1 %v85_v39 }
 0x154   :  { %v82_v40 = vpop.xlane.xlu1 %81 }
 0x155   :  { %v89_v41 = vmul.f32 0.0019569471, %v82_v40 }
 0x157   :  { %208 = vrsqrt.f32 %v89_v41  ;;  %vm93_vm0 = vcmp.eq.f32.partialorder %v89_v41, inf  ;;  %v96_v46 = vand.u32 2147483648, %v89_v41  ;;  %vm95_vm1 = vcmp.eq.f32.partialorder %v89_v41, 0.0 }
 0x158   :  { %v87_v42 = vpop.xlane.xlu1 %86 }
 0x159   :  { %v90_v43 = vmul.f32 0.0019569471, %v87_v42 }
 0x15b   :  { %210 = vrsqrt.f32 %v90_v43  ;;  %vm100_vm2 = vcmp.eq.f32.partialorder %v90_v43, inf  ;;  %v103_v53 = vand.u32 2147483648, %v90_v43  ;;  %vm102_vm3 = vcmp.eq.f32.partialorder %v90_v43, 0.0 }
 0x161   :  { %v209_v44 = vpop.eup %208 }
 0x162   :  { %v92_v45 = vmul.f32 %v209_v44, %v89_v41 }
 0x164   :  { %v94_v47 = vsel %vm93_vm0, %v89_v41, %v92_v45 }
 0x165   :  { %v211_v48 = vpop.eup %210  ;;  %v97_v49 = vsel %vm95_vm1, %v96_v46, %v94_v47 }
 0x166   :  { %v106_v51 = vadd.f32 1e-06, %v97_v49  ;;  %v99_v52 = vmul.f32 %v211_v48, %v90_v43 }
 0x168   :  { %212 = vrcp.f32 %v106_v51  ;;  %v101_v54 = vsel %vm100_vm2, %v90_v43, %v99_v52 }
 0x169   :  { %v104_v55 = vsel %vm102_vm3, %v103_v53, %v101_v54 }
 0x16a   :  { %v107_v57 = vadd.f32 1e-06, %v104_v55 }
 0x16c   :  { %214 = vrcp.f32 %v107_v57 }
 0x172   :  { %v213_v4 = vpop.eup %212 }
 0x173   :  { %v109_v5 = vmul.f32 %v213_v4, %v340_v16  ;;  %v110_v6 = vmul.f32 %v213_v4, %v342_v17  ;;  %v111_v7 = vmul.f32 %v213_v4, %v344_v18  ;;  %v112_v8 = vmul.f32 %v213_v4, %v65_v20 }
 0x175   :  { %v139_v13 = vmul.f32 %v122_v63, %v109_v5  ;;  %v140_v14 = vmul.f32 %v126_v0, %v110_v6  ;;  %v141_v15 = vmul.f32 %v130_v1, %v111_v7  ;;  %v142_v19 = vmul.f32 %v134_v2, %v112_v8 }
 0x176   :  { %v215_v21 = vpop.eup %214 }
 0x177   :  { %v114_v22 = vmul.f32 %v215_v21, %v352_v25  ;;  %v115_v23 = vmul.f32 %v215_v21, %v354_v26  ;;  %v116_v16 = vmul.f32 %v215_v21, %v356_v28  ;;  %v117_v17 = vmul.f32 %v215_v21, %v358_v31 }
 0x178   :  { %v169_v24 = vadd.f32 %v152_v9, %v139_v13  ;;  %v170_v18 = vadd.f32 %v156_v10, %v140_v14  ;;  %v171_v20 = vadd.f32 %v160_v11, %v141_v15  ;;  %v172_v27 = vadd.f32 %v164_v12, %v142_v19 }
 0x179   :  { %v143_v29 = vmul.f32 %v122_v63, %v114_v22  ;;  %v144_v30 = vmul.f32 %v126_v0, %v115_v23  ;;  %v145_v32 = vmul.f32 %v130_v1, %v116_v16  ;;  %v146_v33 = vmul.f32 %v134_v2, %v117_v17 }
 0x17a   :  { %177 = vst [vmem:[#allocation7] sm:$0xff] %v169_v24  ;;  %178 = vst [vmem:[#allocation7 + $0x8] sm:$0xff] %v170_v18 }
 0x17b   :  { %179 = vst [vmem:[#allocation7 + $0x10] sm:$0xff] %v171_v20  ;;  %180 = vst [vmem:[#allocation7 + $0x18] sm:$0xff] %v172_v27  ;;  %v173_v25 = vadd.f32 %v152_v9, %v143_v29  ;;  %v174_v26 = vadd.f32 %v156_v10, %v144_v30  ;;  %v175_v34 = vadd.f32 %v160_v11, %v145_v32 }
 0x17c   :  { %v176_v28 = vadd.f32 %v164_v12, %v146_v33 }
 0x17d   :  { %181 = vst [vmem:[#allocation7 + $0x20] sm:$0xff] %v173_v25  ;;  %182 = vst [vmem:[#allocation7 + $0x28] sm:$0xff] %v174_v26 }
 0x17e   :  { %183 = vst [vmem:[#allocation7 + $0x30] sm:$0xff] %v175_v34  ;;  %184 = vst [vmem:[#allocation7 + $0x38] sm:$0xff] %v176_v28 }
 0x17f   :  { %271 = shalt.err (!%p268_p6)
}
 0x180   :  { %s272_s15 = scalar_lea.hbm %s396_s3, 1024 }
 0x181   :  { %p273_p7 = scmp.ne.s32.totalorder %s396_s3, %s272_s15  ;;  %p276_p8 = scmp.lt.u32.totalorder %s272_s15, %s396_s3 }
 0x183   :  { %p278_p9 = pnand %p276_p8, %p273_p7 }
 0x185   :  { %281 = shalt.err (!%p278_p9)
}
 0x186   :  { %196 = dma.vmem_to_hbm [thread:$0]  %s191_s11, 1024, %s396_s3, [#allocation4], %s289_s22, %s289_s22, %s290_s23  }
 0x187   :  { %286 = dma.done.wait [#allocation4], 1024  }
 0x188   :  { %287 = vsyncadd [#allocation4], 4294966272 }
 0x189   :  { %200 = vsyncpa [#allocation3], 1 }
 0x18a   :  { %201 = vsyncpa [#allocation6], 1 }
 0x18b   :  { %202 = vsyncpa [#allocation4], 1 }

</bundles_post_ra>
